<compile_context>
chip_gen: v6e
topology: v6e:2x2x1
jax: 0.10.0
libtpu: 0.0.40
codegen_flags: <defaults>
</compile_context>

<pallas_src>
import functools

import jax
import jax.numpy as jnp
from jax import lax
from jax.experimental import pallas as pl
from jax.experimental.pallas import tpu as pltpu


# ----------------------------------------------------------------------------
# Kernel 1: chunk-parallel simple-GLA recurrence (the hot path).
#   Grid = (B*H, N//C).  State (Dh, Dh) carried in VMEM scratch across chunks.
# ----------------------------------------------------------------------------
def _chunk_gla_kernel(q_ref, k_ref, v_ref, bcol_ref, brow_ref, o_ref, s_ref):
    # q/k/v/o blocks: (1, C, Dh); bcol: (1, C, 1); brow: (1, 1, 1, C); s: (Dh, Dh) f32
    c = q_ref.shape[1]

    @pl.when(pl.program_id(1) == 0)          # new (batch, head): reset state
    def _():
        s_ref[...] = jnp.zeros_like(s_ref)

    q = q_ref[0]                              # (C, Dh)
    k = k_ref[0]                              # (C, Dh)
    v = v_ref[0]                              # (C, Dh)
    b_col = bcol_ref[0]                       # (C, 1)  within-chunk cumulative log-decay
    b_row = brow_ref[0, 0]                    # (1, C)  same values, lane-major
    s0 = s_ref[...]                           # (Dh, Dh) f32 state from previous chunk

    nt = (((1,), (1,)), ((), ()))             # contract last dims  ->  A @ B^T
    tn = (((0,), (0,)), ((), ()))             # contract first dims ->  A^T @ B

    # Intra-chunk: score[t,s] = (q_t·k_s) * exp(b_t - b_s) for s<=t (values in (0,1]).
    ridx = lax.broadcasted_iota(jnp.int32, (c, c), 0)
    cidx = lax.broadcasted_iota(jnp.int32, (c, c), 1)
    dmat = jnp.where(ridx >= cidx, jnp.exp(b_col - b_row), 0.0)            # (C, C) f32
    scores = lax.dot_general(q, k, nt, preferred_element_type=jnp.float32) * dmat
    o_intra = jnp.dot(scores.astype(v.dtype), v, preferred_element_type=jnp.float32)

    # Inter-chunk: o_t += exp(b_t) * q_t @ S0   (state kept in f32)
    q_g = q.astype(jnp.float32) * jnp.exp(b_col)                           # (C, Dh)
    o_inter = jnp.dot(q_g, s0, preferred_element_type=jnp.float32)
    o_ref[0] = (o_intra + o_inter).astype(o_ref.dtype)                     # dense (C,Dh) slab

    # State update: S_C = exp(b_C)*S0 + sum_s exp(b_C - b_s) k_s ⊗ v_s   (factors <= 1)
    b_last = b_col[c - 1:c, :]                                             # (1, 1)
    k_g = (k.astype(jnp.float32) * jnp.exp(b_last - b_col)).astype(v.dtype)
    s_ref[...] = jnp.exp(b_last) * s0 + lax.dot_general(
        k_g, v, tn, preferred_element_type=jnp.float32)


def _pick_chunk(n):
    # v6e/v7x MXU is 2x256x256 -> C=256 fills it; v5e (4x128x128) saturates at 128.
    for c in (256, 128, 64, 32, 16, 8):
        if n % c == 0:
            return c
    return n  # fallback: whole sequence as one chunk (block == full array dims)


def simple_gla_chunked(q, k, v, f_log, *, chunk_size=None, compute_dtype=jnp.float32):
    """q, k, v: (BH, N, Dh); f_log: (BH, N) per-step log decay. Returns (BH, N, Dh) f32."""
    bh, n, dh = q.shape
    c = _pick_chunk(n) if chunk_size is None else chunk_size
    assert n % c == 0, f"seq_len {n} must be divisible by chunk {c}"
    nc = n // c

    # Within-chunk cumulative log decay, precomputed in the wrapper (tiny elementwise work).
    b_cs = jnp.cumsum(f_log.astype(jnp.float32).reshape(bh, nc, c), axis=-1)
    b_col = b_cs.reshape(bh, n, 1)            # column orientation for (C, Dh) broadcasts
    b_row = b_cs.reshape(bh, nc, 1, c)        # row orientation for the (C, C) decay matrix

    qkv_spec = pl.BlockSpec((1, c, dh), lambda i, j: (i, j, 0))
    return pl.pallas_call(
        _chunk_gla_kernel,
        out_shape=jax.ShapeDtypeStruct((bh, n, dh), jnp.float32),
        grid=(bh, nc),
        in_specs=[
            qkv_spec, qkv_spec, qkv_spec,
            pl.BlockSpec((1, c, 1), lambda i, j: (i, j, 0)),
            pl.BlockSpec((1, 1, 1, c), lambda i, j: (i, j, 0, 0)),
        ],
        out_specs=qkv_spec,
        scratch_shapes=[pltpu.VMEM((dh, dh), jnp.float32)],
        compiler_params=pltpu.CompilerParams(
            dimension_semantics=("parallel", "arbitrary"),   # heads across cores, chunks serial
            vmem_limit_bytes=32 * 1024 * 1024),
    )(q.astype(compute_dtype), k.astype(compute_dtype), v.astype(compute_dtype),
      b_col, b_row)


# ----------------------------------------------------------------------------
# Kernel 2: fused output path  (sigmoid gate * y) -> LayerNorm(no bias) -> out_proj
#   Row-tiled; out_proj weight kept in PyTorch (out, in) layout and contracted on dim 1.
# ----------------------------------------------------------------------------
def _gate_norm_proj_kernel(y_ref, gate_ref, lnw_ref, wout_ref, out_ref):
    y = y_ref[...].astype(jnp.float32) * jax.nn.sigmoid(gate_ref[...].astype(jnp.float32))
    mu = jnp.mean(y, axis=-1, keepdims=True)
    yc = y - mu
    var = jnp.mean(yc * yc, axis=-1, keepdims=True)
    yn = yc * lax.rsqrt(var + 1e-5) * lnw_ref[...]                     # LayerNorm, bias=False
    out_ref[...] = lax.dot_general(
        yn.astype(wout_ref.dtype), wout_ref[...],
        (((1,), (1,)), ((), ())),                                      # yn @ w_out^T (no relayout)
        preferred_element_type=jnp.float32).astype(out_ref.dtype)


def gate_norm_proj(y, gate_pre, ln_w, w_out, *, row_tile=512, compute_dtype=jnp.float32):
    """y, gate_pre: (M, D); ln_w: (D,); w_out: (D, D) PyTorch layout (out, in)."""
    m, d = y.shape
    tm = m if m <= row_tile else row_tile
    # TODO(synk): for very large embed_dim also tile w_out over output columns; row tiling
    #             alone keeps the full (D, D) weight resident in VMEM.
    return pl.pallas_call(
        _gate_norm_proj_kernel,
        out_shape=jax.ShapeDtypeStruct((m, d), jnp.float32),
        grid=(pl.cdiv(m, tm),),
        in_specs=[
            pl.BlockSpec((tm, d), lambda i: (i, 0)),
            pl.BlockSpec((tm, d), lambda i: (i, 0)),
            pl.BlockSpec((1, d), lambda i: (0, 0)),
            pl.BlockSpec((d, d), lambda i: (0, 0)),
        ],
        out_specs=pl.BlockSpec((tm, d), lambda i: (i, 0)),
        compiler_params=pltpu.CompilerParams(
            dimension_semantics=("parallel",),
            vmem_limit_bytes=48 * 1024 * 1024),
    )(y, gate_pre, ln_w.reshape(1, d), w_out.astype(compute_dtype))


# ----------------------------------------------------------------------------
# PolarRnn forward (glue in JAX, hot paths in Pallas)
# ----------------------------------------------------------------------------
def l2_norm(x, eps=1e-12):
    n = jnp.sqrt(jnp.sum(x * x, axis=-1, keepdims=True))
    return x / jnp.maximum(n, eps)


def init_params(key, embed_dim, num_heads, init_std=0.02):
    head_dim = embed_dim // num_heads
    ks = jax.random.split(key, 8)
    nrm = lambda k, shape: (init_std * jax.random.normal(k, shape)).astype(jnp.float32)
    return {
        "w_q": nrm(ks[0], (embed_dim, embed_dim)),       # PyTorch Linear weight (out, in)
        "w_k": nrm(ks[1], (embed_dim, embed_dim)),
        "w_v": nrm(ks[2], (embed_dim, embed_dim)),
        "w_f": nrm(ks[3], (num_heads, embed_dim)),
        "w_gamma": nrm(ks[4], (num_heads, embed_dim)),
        "w_og1": nrm(ks[5], (head_dim, embed_dim)),
        "w_og2": nrm(ks[6], (embed_dim, head_dim)),
        "w_out": nrm(ks[7], (embed_dim, embed_dim)),
        "ln_w": jnp.ones((embed_dim,), jnp.float32),     # LayerNorm weight, bias=False
    }


@functools.partial(jax.jit, static_argnames=("num_heads", "chunk_size"))
def polar_rnn_forward(params, x, num_heads, chunk_size=None):
    b, n, d = x.shape
    h = num_heads
    hd = d // h

    # projections + activations (glue; dense GEMMs handled well by XLA)
    q = jax.nn.silu(x @ params["w_q"].T)
    k = jax.nn.silu(x @ params["w_k"].T)
    v = jax.nn.silu(x @ params["w_v"].T)                       # scalar_decay=True path
    f = jax.nn.log_sigmoid(x @ params["w_f"].T)                # (b, n, h) log decay
    _gamma = -jax.nn.sigmoid(x @ params["w_gamma"].T)          # computed, unused (debug=1); DCE'd

    # split heads: (b, n, h, hd) -> (b*h, n, hd)
    # TODO(synk): when head_dim is a multiple of 128 these transposes can be removed by
    #             selecting the head via the BlockSpec index_map directly on (b, n, d);
    #             at head_dim < 128 the (8,128) lane rule forces this packed layout.
    def to_heads(t):
        return jnp.transpose(t.reshape(b, n, h, hd), (0, 2, 1, 3)).reshape(b * h, n, hd)

    qh = to_heads(q)
    kh = to_heads(l2_norm(k.reshape(b, n, h, hd)).reshape(b, n, d))
    vh = to_heads(v)
    fh = jnp.transpose(f, (0, 2, 1)).reshape(b * h, n)

    # Pallas hot path: chunk-parallel simple-GLA
    oh = simple_gla_chunked(qh, kh, vh, fh, chunk_size=chunk_size)   # (b*h, n, hd)

    # merge heads back: (b, n, d)
    o = jnp.transpose(oh.reshape(b, h, n, hd), (0, 2, 1, 3)).reshape(b, n, d)

    # output gate pre-activation (bottleneck MLP, no intermediate nonlinearity)
    gate_pre = (x @ params["w_og1"].T) @ params["w_og2"].T           # (b, n, d)

    # Pallas fused: sigmoid-gate * o -> LayerNorm -> out_proj
    out = gate_norm_proj(
        o.reshape(b * n, d),
        gate_pre.reshape(b * n, d),
        params["ln_w"],
        params["w_out"],
    ).reshape(b, n, d)
    return out


# ----------------------------------------------------------------------------
# Pure-JAX references (correctness sanity checks).
# ----------------------------------------------------------------------------
def ref_simple_gla(q, k, v, f_log):
    def per_head(qh, kh, vh, fh):
        def step(S, inp):
            qt, kt, vt, ft = inp
            S = jnp.exp(ft) * S + kt[:, None] * vt[None, :]
            return S, qt @ S
        S0 = jnp.zeros((q.shape[-1], q.shape[-1]), jnp.float32)
        _, o = lax.scan(step, S0, (qh, kh, vh, fh))
        return o
    return jax.vmap(per_head)(q, k, v, f_log)


def ref_forward(params, x, num_heads):
    b, n, d = x.shape
    h = num_heads
    hd = d // h
    q = jax.nn.silu(x @ params["w_q"].T)
    k = jax.nn.silu(x @ params["w_k"].T)
    v = jax.nn.silu(x @ params["w_v"].T)
    f = jax.nn.log_sigmoid(x @ params["w_f"].T)
    to_heads = lambda t: jnp.transpose(t.reshape(b, n, h, hd), (0, 2, 1, 3)).reshape(b * h, n, hd)
    qh = to_heads(q)
    kh = to_heads(l2_norm(k.reshape(b, n, h, hd)).reshape(b, n, d))
    vh = to_heads(v)
    fh = jnp.transpose(f, (0, 2, 1)).reshape(b * h, n)
    oh = ref_simple_gla(qh, kh, vh, fh)
    o = jnp.transpose(oh.reshape(b, h, n, hd), (0, 2, 1, 3)).reshape(b, n, d)
    gate = jax.nn.sigmoid((x @ params["w_og1"].T) @ params["w_og2"].T)
    y = o * gate
    mu = jnp.mean(y, axis=-1, keepdims=True)
    yc = y - mu
    var = jnp.mean(yc * yc, axis=-1, keepdims=True)
    yn = yc * lax.rsqrt(var + 1e-5) * params["ln_w"]
    return yn @ params["w_out"].T


if __name__ == "__main__":
    B, N, D, H = 2, 16, 32, 4   # batch, seq, embed_dim, num_heads -> head_dim = 8
    CHUNK = 8                   # N//CHUNK = 2 chunks -> exercises the cross-chunk state carry
    key = jax.random.PRNGKey(0)
    kx, kp = jax.random.split(key)
    x = jax.random.normal(kx, (B, N, D), dtype=jnp.float32)
    params = init_params(kp, D, H)

    out = polar_rnn_forward(params, x, num_heads=H, chunk_size=CHUNK)
    jax.block_until_ready(out)
    assert out.shape == (B, N, D)

    # 1) chunked Pallas recurrence vs. sequential pure-JAX scan
    hd = D // H
    q = jax.nn.silu(x @ params["w_q"].T)
    k = jax.nn.silu(x @ params["w_k"].T)
    v = jax.nn.silu(x @ params["w_v"].T)
    f = jax.nn.log_sigmoid(x @ params["w_f"].T)
    to_heads = lambda t: jnp.transpose(t.reshape(B, N, H, hd), (0, 2, 1, 3)).reshape(B * H, N, hd)
    qh = to_heads(q)
    kh = to_heads(l2_norm(k.reshape(B, N, H, hd)).reshape(B, N, D))
    vh = to_heads(v)
    fh = jnp.transpose(f, (0, 2, 1)).reshape(B * H, N)
    o_pl = simple_gla_chunked(qh, kh, vh, fh, chunk_size=CHUNK)
    o_ref = ref_simple_gla(qh, kh, vh, fh)
    assert jnp.allclose(o_pl, o_ref, atol=1e-4, rtol=1e-3), "recurrence mismatch"

    # 2) end-to-end forward vs. pure-JAX reference (covers the gate/LN/proj kernel)
    out_ref = ref_forward(params, x, num_heads=H)
    assert jnp.allclose(out, out_ref, atol=1e-3, rtol=1e-2), "forward mismatch"

    # 3) bf16-MXU-operand path (state/accumulators stay f32) compiles and runs
    o_bf16 = simple_gla_chunked(qh, kh, vh, fh, chunk_size=CHUNK, compute_dtype=jnp.bfloat16)
    jax.block_until_ready(o_bf16)
    assert bool(jnp.all(jnp.isfinite(o_bf16)))

    print("KERNEL_OK")
</pallas_src>

<mosaic_0001>
module attributes {stable_mosaic.version = 11 : i64} {
  func.func @_chunk_gla_kernel(%arg0: i32, %arg1: i32, %arg2: memref<1x8x8xf32, #tpu.memory_space<vmem>>, %arg3: memref<1x8x8xf32, #tpu.memory_space<vmem>>, %arg4: memref<1x8x8xf32, #tpu.memory_space<vmem>>, %arg5: memref<1x8x1xf32, #tpu.memory_space<vmem>>, %arg6: memref<1x1x1x8xf32, #tpu.memory_space<vmem>>, %arg7: memref<1x8x8xf32, #tpu.memory_space<vmem>>, %arg8: memref<8x8xf32, #tpu.memory_space<vmem>>) attributes {dimension_semantics = [#tpu.dimension_semantics<parallel>, #tpu.dimension_semantics<arbitrary>], iteration_bounds = array<i64: 8, 2>, scalar_prefetch = 0 : i64, scratch_operands = 1 : i64, tpu.core_type = #tpu.core_type<tc>, window_params = [{transform_indices = @transform_0, window_bounds = array<i64: 1, 8, 8>}, {transform_indices = @transform_1, window_bounds = array<i64: 1, 8, 8>}, {transform_indices = @transform_2, window_bounds = array<i64: 1, 8, 8>}, {transform_indices = @transform_3, window_bounds = array<i64: 1, 8, 1>}, {transform_indices = @transform_4, window_bounds = array<i64: 1, 1, 1, 8>}, {transform_indices = @transform_5, window_bounds = array<i64: 1, 8, 8>}]} {
    %c0_i32 = arith.constant 0 : i32
    %0 = arith.cmpi eq, %arg1, %c0_i32 : i32
    %1 = arith.extui %0 : i1 to i32
    %c0_i32_0 = arith.constant 0 : i32
    %2 = arith.cmpi ne, %1, %c0_i32_0 : i32
    scf.if %2 {
      %cst_27 = arith.constant 0.000000e+00 : f32
      %46 = vector.broadcast %cst_27 : f32 to vector<8x8xf32>
      %c0_28 = arith.constant 0 : index
      %c0_29 = arith.constant 0 : index
      %47 = vector.load %arg8[%c0_28, %c0_29] : memref<8x8xf32, #tpu.memory_space<vmem>>, vector<8x8xf32>
      tpu.vector_store %arg8[%c0_28, %c0_29], %46 {strides = array<i32>} : memref<8x8xf32, #tpu.memory_space<vmem>>, vector<8x8xf32>,
    } else {
    }
    %c0 = arith.constant 0 : index
    %c0_1 = arith.constant 0 : index
    %c0_2 = arith.constant 0 : index
    %3 = vector.load %arg2[%c0, %c0_1, %c0_2] : memref<1x8x8xf32, #tpu.memory_space<vmem>>, vector<1x8x8xf32>
    %4 = vector.shape_cast %3 : vector<1x8x8xf32> to vector<8x8xf32>
    %c0_3 = arith.constant 0 : index
    %c0_4 = arith.constant 0 : index
    %c0_5 = arith.constant 0 : index
    %5 = vector.load %arg3[%c0_3, %c0_4, %c0_5] : memref<1x8x8xf32, #tpu.memory_space<vmem>>, vector<1x8x8xf32>
    %6 = vector.shape_cast %5 : vector<1x8x8xf32> to vector<8x8xf32>
    %c0_6 = arith.constant 0 : index
    %c0_7 = arith.constant 0 : index
    %c0_8 = arith.constant 0 : index
    %7 = vector.load %arg4[%c0_6, %c0_7, %c0_8] : memref<1x8x8xf32, #tpu.memory_space<vmem>>, vector<1x8x8xf32>
    %8 = vector.shape_cast %7 : vector<1x8x8xf32> to vector<8x8xf32>
    %c0_9 = arith.constant 0 : index
    %c0_10 = arith.constant 0 : index
    %c0_11 = arith.constant 0 : index
    %9 = vector.load %arg5[%c0_9, %c0_10, %c0_11] : memref<1x8x1xf32, #tpu.memory_space<vmem>>, vector<1x8x1xf32>
    %10 = vector.shape_cast %9 : vector<1x8x1xf32> to vector<8x1xf32>
    %c0_12 = arith.constant 0 : index
    %c0_13 = arith.constant 0 : index
    %c0_14 = arith.constant 0 : index
    %c0_15 = arith.constant 0 : index
    %11 = vector.load %arg6[%c0_12, %c0_13, %c0_14, %c0_15] : memref<1x1x1x8xf32, #tpu.memory_space<vmem>>, vector<1x1x1x8xf32>
    %12 = vector.shape_cast %11 : vector<1x1x1x8xf32> to vector<1x8xf32>
    %c0_16 = arith.constant 0 : index
    %c0_17 = arith.constant 0 : index
    %13 = vector.load %arg8[%c0_16, %c0_17] : memref<8x8xf32, #tpu.memory_space<vmem>>, vector<8x8xf32>
    %14 = tpu.iota {dimensions = array<i32: 0>} : vector<8x8xi32>
    %15 = tpu.iota {dimensions = array<i32: 1>} : vector<8x8xi32>
    %16 = arith.cmpi sge, %14, %15 : vector<8x8xi32>
    %17 = vector.broadcast %10 : vector<8x1xf32> to vector<8x8xf32>
    %18 = vector.broadcast %12 : vector<1x8xf32> to vector<8x8xf32>
    %19 = arith.subf %17, %18 : vector<8x8xf32>
    %20 = math.exp %19 : vector<8x8xf32>
    %cst = arith.constant 0.000000e+00 : f32
    %21 = vector.broadcast %cst : f32 to vector<8x8xf32>
    %22 = arith.select %16, %20, %21 : vector<8x8xi1>, vector<8x8xf32>
    %cst_18 = arith.constant dense<0.000000e+00> : vector<8x8xf32>
    %23 = tpu.matmul %4, %6, %cst_18 {dimension_numbers = #tpu.dot_dimension_numbers<[1], [1], [0], [0], [0, 0, 1, 0], [], []>} : vector<8x8xf32>, vector<8x8xf32>, vector<8x8xf32> -> vector<8x8xf32>
    %24 = arith.mulf %23, %22 : vector<8x8xf32>
    %cst_19 = arith.constant dense<0.000000e+00> : vector<8x8xf32>
    %25 = tpu.matmul %24, %8, %cst_19 {dimension_numbers = #tpu.dot_dimension_numbers<[1], [0], [0], [1], [0, 0, 1, 1], [], []>} : vector<8x8xf32>, vector<8x8xf32>, vector<8x8xf32> -> vector<8x8xf32>
    %26 = math.exp %10 : vector<8x1xf32>
    %27 = vector.broadcast %26 : vector<8x1xf32> to vector<8x8xf32>
    %28 = arith.mulf %4, %27 : vector<8x8xf32>
    %cst_20 = arith.constant dense<0.000000e+00> : vector<8x8xf32>
    %29 = tpu.matmul %28, %13, %cst_20 {dimension_numbers = #tpu.dot_dimension_numbers<[1], [0], [0], [1], [0, 0, 1, 1], [], []>} : vector<8x8xf32>, vector<8x8xf32>, vector<8x8xf32> -> vector<8x8xf32>
    %30 = arith.addf %25, %29 : vector<8x8xf32>
    %c0_21 = arith.constant 0 : index
    %c0_22 = arith.constant 0 : index
    %c0_23 = arith.constant 0 : index
    %31 = vector.load %arg7[%c0_21, %c0_22, %c0_23] : memref<1x8x8xf32, #tpu.memory_space<vmem>>, vector<1x8x8xf32>
    %32 = vector.shape_cast %31 : vector<1x8x8xf32> to vector<8x8xf32>
    %33 = vector.shape_cast %30 : vector<8x8xf32> to vector<1x8x8xf32>
    tpu.vector_store %arg7[%c0_21, %c0_22, %c0_23], %33 {strides = array<i32>} : memref<1x8x8xf32, #tpu.memory_space<vmem>>, vector<1x8x8xf32>,
    %34 = vector.extract_strided_slice %10 {offsets = [7, 0], sizes = [1, 1], strides = [1, 1]} : vector<8x1xf32> to vector<1x1xf32>
    %35 = vector.broadcast %34 : vector<1x1xf32> to vector<8x1xf32>
    %36 = arith.subf %35, %10 : vector<8x1xf32>
    %37 = math.exp %36 : vector<8x1xf32>
    %38 = vector.broadcast %37 : vector<8x1xf32> to vector<8x8xf32>
    %39 = arith.mulf %6, %38 : vector<8x8xf32>
    %40 = math.exp %34 : vector<1x1xf32>
    %41 = vector.broadcast %40 : vector<1x1xf32> to vector<8x8xf32>
    %42 = arith.mulf %41, %13 : vector<8x8xf32>
    %cst_24 = arith.constant dense<0.000000e+00> : vector<8x8xf32>
    %43 = tpu.matmul %39, %8, %cst_24 {dimension_numbers = #tpu.dot_dimension_numbers<[0], [0], [1], [1], [0, 1, 1, 1], [], []>} : vector<8x8xf32>, vector<8x8xf32>, vector<8x8xf32> -> vector<8x8xf32>
    %44 = arith.addf %42, %43 : vector<8x8xf32>
    %c0_25 = arith.constant 0 : index
    %c0_26 = arith.constant 0 : index
    %45 = vector.load %arg8[%c0_25, %c0_26] : memref<8x8xf32, #tpu.memory_space<vmem>>, vector<8x8xf32>
    tpu.vector_store %arg8[%c0_25, %c0_26], %44 {strides = array<i32>} : memref<8x8xf32, #tpu.memory_space<vmem>>, vector<8x8xf32>,
    return
  }
  func.func @transform_0(%arg0: i32, %arg1: i32) -> (i32, i32, i32) {
    %c0_i32 = arith.constant 0 : i32
    %c0_i32_0 = arith.constant 0 : i32
    return %arg0, %arg1, %c0_i32 : i32, i32, i32
  }
  func.func @transform_1(%arg0: i32, %arg1: i32) -> (i32, i32, i32) {
    %c0_i32 = arith.constant 0 : i32
    %c0_i32_0 = arith.constant 0 : i32
    return %arg0, %arg1, %c0_i32 : i32, i32, i32
  }
  func.func @transform_2(%arg0: i32, %arg1: i32) -> (i32, i32, i32) {
    %c0_i32 = arith.constant 0 : i32
    %c0_i32_0 = arith.constant 0 : i32
    return %arg0, %arg1, %c0_i32 : i32, i32, i32
  }
  func.func @transform_3(%arg0: i32, %arg1: i32) -> (i32, i32, i32) {
    %c0_i32 = arith.constant 0 : i32
    %c0_i32_0 = arith.constant 0 : i32
    return %arg0, %arg1, %c0_i32 : i32, i32, i32
  }
  func.func @transform_4(%arg0: i32, %arg1: i32) -> (i32, i32, i32, i32) {
    %c0_i32 = arith.constant 0 : i32
    %c0_i32_0 = arith.constant 0 : i32
    %c0_i32_1 = arith.constant 0 : i32
    return %arg0, %arg1, %c0_i32, %c0_i32_0 : i32, i32, i32, i32
  }
  func.func @transform_5(%arg0: i32, %arg1: i32) -> (i32, i32, i32) {
    %c0_i32 = arith.constant 0 : i32
    %c0_i32_0 = arith.constant 0 : i32
    return %arg0, %arg1, %c0_i32 : i32, i32, i32
  }
}

module attributes {stable_mosaic.version = 11 : i64} {
  func.func @_gate_norm_proj_kernel(%arg0: i32, %arg1: memref<32x32xf32, #tpu.memory_space<vmem>>, %arg2: memref<32x32xf32, #tpu.memory_space<vmem>>, %arg3: memref<1x32xf32, #tpu.memory_space<vmem>>, %arg4: memref<32x32xf32, #tpu.memory_space<vmem>>, %arg5: memref<32x32xf32, #tpu.memory_space<vmem>>) attributes {dimension_semantics = [#tpu.dimension_semantics<parallel>], iteration_bounds = array<i64: 1>, scalar_prefetch = 0 : i64, scratch_operands = 0 : i64, tpu.core_type = #tpu.core_type<tc>, window_params = [{transform_indices = @transform_0, window_bounds = array<i64: 32, 32>}, {transform_indices = @transform_1, window_bounds = array<i64: 32, 32>}, {pipeline_mode = #tpu.pipeline_mode<synchronous>, transform_indices = @transform_2, window_bounds = array<i64: 1, 32>}, {pipeline_mode = #tpu.pipeline_mode<synchronous>, transform_indices = @transform_3, window_bounds = array<i64: 32, 32>}, {transform_indices = @transform_4, window_bounds = array<i64: 32, 32>}]} {
    %c0 = arith.constant 0 : index
    %c0_0 = arith.constant 0 : index
    %0 = vector.load %arg1[%c0, %c0_0] : memref<32x32xf32, #tpu.memory_space<vmem>>, vector<32x32xf32>
    %c0_1 = arith.constant 0 : index
    %c0_2 = arith.constant 0 : index
    %1 = vector.load %arg2[%c0_1, %c0_2] : memref<32x32xf32, #tpu.memory_space<vmem>>, vector<32x32xf32>
    %2 = arith.negf %1 : vector<32x32xf32>
    %3 = math.exp %2 : vector<32x32xf32>
    %cst = arith.constant 1.000000e+00 : f32
    %4 = vector.broadcast %cst : f32 to vector<32x32xf32>
    %5 = arith.addf %4, %3 : vector<32x32xf32>
    %6 = arith.divf %4, %5 : vector<32x32xf32>
    %7 = arith.mulf %0, %6 : vector<32x32xf32>
    %cst_3 = arith.constant dense<0.000000e+00> : vector<32xf32>
    %8 = vector.multi_reduction <add>, %7, %cst_3 [1] : vector<32x32xf32> to vector<32xf32>
    %9 = vector.shape_cast %8 : vector<32xf32> to vector<32x1xf32>
    %cst_4 = arith.constant 3.200000e+01 : f32
    %10 = vector.broadcast %cst_4 : f32 to vector<32x1xf32>
    %11 = arith.divf %9, %10 : vector<32x1xf32>
    %12 = vector.broadcast %11 : vector<32x1xf32> to vector<32x32xf32>
    %13 = arith.subf %7, %12 : vector<32x32xf32>
    %14 = arith.mulf %13, %13 : vector<32x32xf32>
    %cst_5 = arith.constant dense<0.000000e+00> : vector<32xf32>
    %15 = vector.multi_reduction <add>, %14, %cst_5 [1] : vector<32x32xf32> to vector<32xf32>
    %16 = vector.shape_cast %15 : vector<32xf32> to vector<32x1xf32>
    %cst_6 = arith.constant 3.200000e+01 : f32
    %17 = vector.broadcast %cst_6 : f32 to vector<32x1xf32>
    %18 = arith.divf %16, %17 : vector<32x1xf32>
    %cst_7 = arith.constant 9.99999974E-6 : f32
    %19 = vector.broadcast %cst_7 : f32 to vector<32x1xf32>
    %20 = arith.addf %18, %19 : vector<32x1xf32>
    %21 = math.rsqrt %20 : vector<32x1xf32>
    %22 = vector.broadcast %21 : vector<32x1xf32> to vector<32x32xf32>
    %23 = arith.mulf %13, %22 : vector<32x32xf32>
    %c0_8 = arith.constant 0 : index
    %c0_9 = arith.constant 0 : index
    %24 = vector.load %arg3[%c0_8, %c0_9] : memref<1x32xf32, #tpu.memory_space<vmem>>, vector<1x32xf32>
    %25 = vector.broadcast %24 : vector<1x32xf32> to vector<32x32xf32>
    %26 = arith.mulf %23, %25 : vector<32x32xf32>
    %c0_10 = arith.constant 0 : index
    %c0_11 = arith.constant 0 : index
    %27 = vector.load %arg4[%c0_10, %c0_11] : memref<32x32xf32, #tpu.memory_space<vmem>>, vector<32x32xf32>
    %cst_12 = arith.constant dense<0.000000e+00> : vector<32x32xf32>
    %28 = tpu.matmul %26, %27, %cst_12 {dimension_numbers = #tpu.dot_dimension_numbers<[1], [1], [0], [0], [0, 0, 1, 0], [], []>} : vector<32x32xf32>, vector<32x32xf32>, vector<32x32xf32> -> vector<32x32xf32>
    %c0_13 = arith.constant 0 : index
    %c0_14 = arith.constant 0 : index
    %29 = vector.load %arg5[%c0_13, %c0_14] : memref<32x32xf32, #tpu.memory_space<vmem>>, vector<32x32xf32>
    tpu.vector_store %arg5[%c0_13, %c0_14], %28 {strides = array<i32>} : memref<32x32xf32, #tpu.memory_space<vmem>>, vector<32x32xf32>,
    return
  }
  func.func @transform_0(%arg0: i32) -> (i32, i32) {
    %c0_i32 = arith.constant 0 : i32
    %c0_i32_0 = arith.constant 0 : i32
    return %arg0, %c0_i32 : i32, i32
  }
  func.func @transform_1(%arg0: i32) -> (i32, i32) {
    %c0_i32 = arith.constant 0 : i32
    %c0_i32_0 = arith.constant 0 : i32
    return %arg0, %c0_i32 : i32, i32
  }
  func.func @transform_2(%arg0: i32) -> (i32, i32) {
    %c0_i32 = arith.constant 0 : i32
    %c0_i32_0 = arith.constant 0 : i32
    %c0_i32_1 = arith.constant 0 : i32
    return %c0_i32, %c0_i32_0 : i32, i32
  }
  func.func @transform_3(%arg0: i32) -> (i32, i32) {
    %c0_i32 = arith.constant 0 : i32
    %c0_i32_0 = arith.constant 0 : i32
    %c0_i32_1 = arith.constant 0 : i32
    return %c0_i32, %c0_i32_0 : i32, i32
  }
  func.func @transform_4(%arg0: i32) -> (i32, i32) {
    %c0_i32 = arith.constant 0 : i32
    %c0_i32_0 = arith.constant 0 : i32
    return %arg0, %c0_i32 : i32, i32
  }
}

</mosaic_0001>

<bundles_post_ra>
// kernel: polar_rnn_forward.3
= control target key start
LH: loop header
LB: loop body
LE: loop exit
PB: predicated region body
PF: predicated region fallthrough
CT: control target
= control target key end

     0   :  { %s451_s0 = inlined_call_operand.vmem [shape: f32[32,32], index: 0, kind: input, shape index: {}]   ;;  %s452_s1 = inlined_call_operand.vmem [shape: f32[32,32], index: 1, kind: input, shape index: {}]   ;;  %s453_s2 = inlined_call_operand.vmem [shape: f32[1,32], index: 2, kind: input, shape index: {}]   ;;  %s454_s3 = inlined_call_operand.vmem [shape: f32[32,32], index: 3, kind: input, shape index: {}]   ;;  %s455_s4 = inlined_call_operand.hbm [shape: f32[32,32], index: 4, kind: output, shape index: {}]  }
   0x1   :  { %v22_v0 = vld [vmem:[%s452_s1] sm:$0xff]  ;;  %v23_v2 = vld [vmem:[%s452_s1 + $0x8] sm:$0xff]  ;;  %v24_v3 = vld [vmem:[%s452_s1 + $0x10] sm:$0xff] }
   0x2   :  { %v252_v1 = vmul.f32 -1.442695, %v22_v0  ;;  %v253_v4 = vmul.f32 -1.442695, %v23_v2  ;;  %v254_v5 = vmul.f32 -1.442695, %v24_v3 }
   0x3   :  { %v25_v6 = vld [vmem:[%s452_s1 + $0x18] sm:$0xff] }
   0x4   :  { %298 = vpow2.f32 %v252_v1  ;;  %v255_v7 = vmul.f32 -1.442695, %v25_v6 }
   0x5   :  { %9 = vsyncpa [#allocation3], 0  ;;  %300 = vpow2.f32 %v253_v4  ;;  %v18_v16 = vld [vmem:[%s451_s0] sm:$0xff]  ;;  %v19_v17 = vld [vmem:[%s451_s0 + $0x8] sm:$0xff]  ;;  %vm54_vm0 = vcmask 261120  }
   0x6   :  { %302 = vpow2.f32 %v254_v5  ;;  %v20_v19 = vld [vmem:[%s451_s0 + $0x10] sm:$0xff]  ;;  %v21_v22 = vld [vmem:[%s451_s0 + $0x18] sm:$0xff]  ;;  %v120_v54 = vld [vmem:[%s454_s3 + $0x8] sm:$0xff] }
   0x7   :  { %304 = vpow2.f32 %v255_v7  ;;  %v122_v52 = vld [vmem:[%s454_s3 + $0x18] sm:$0xff]  ;;  %v121_v53 = vld [vmem:[%s454_s3 + $0x10] sm:$0xff]  ;;  %v119_v55 = vld [vmem:[%s454_s3] sm:$0xff] }
   0x8   :  { %273 = vmatprep.subr.msk.mxu0 %vm54_vm0, %v122_v52  ;;  %287 = vmatprep.subr.msk.mxu1 %vm54_vm0, %v122_v52  ;;  %v256_v5 = vld [vmem:[%s453_s2] ss:$0 sm:$0xff]  ;;  %s344_s2 = smov [#allocation2]  }
   0x9   :  { %274 = vmatpush3.xpose.msk.msra.mxu0 %vm54_vm0, %v122_v52  ;;  %291 = vmatpush3.xpose.msk.msra.mxu1 %vm54_vm0, %v122_v52  ;;  %s241_s12 = sshll.u32 %s344_s2, 4  ;;  %s242_s12 = int_to_ptr.vmem [resolvable:$true] %s241_s12 }
   0xa   :  { %275 = vmatprep.subr.msk.mxu0 %vm54_vm0, %v121_v53  ;;  %288 = vmatprep.subr.msk.mxu1 %vm54_vm0, %v121_v53  ;;  %s322_s13 = scalar_lea.vmem %s242_s12, 512  ;;  %p327_p1 = scmp.lt.s32.totalorder %s242_s12, %s242_s12 }
   0xb   :  { %p323_p0 = scmp.ne.s32.totalorder %s242_s12, %s322_s13  ;;  %p328_p2 = scmp.lt.s32.totalorder %s322_s13, %s322_s13 }
   0xd   :  { %276 = vmatpush3.xpose.msk.msra.mxu0 %vm54_vm0, %v121_v53  ;;  %292 = vmatpush3.xpose.msk.msra.mxu1 %vm54_vm0, %v121_v53  ;;  %p329_p3 = por %p328_p2, %p327_p1 }
   0xe   :  { %277 = vmatprep.subr.msk.mxu0 %vm54_vm0, %v120_v54  ;;  %289 = vmatprep.subr.msk.mxu1 %vm54_vm0, %v120_v54 }
   0xf   :  { %p330_p4 = pnand %p329_p3, %p323_p0 }
  0x11   :  { %v299_v8 = vpop.eup %298  ;;  %278 = vmatpush3.xpose.msk.msra.mxu0 %vm54_vm0, %v120_v54  ;;  %293 = vmatpush3.xpose.msk.msra.mxu1 %vm54_vm0, %v120_v54 }
  0x12   :  { %v301_v9 = vpop.eup %300  ;;  %v38_v10 = vadd.f32 1.0, %v299_v8  ;;  %279 = vmatprep.subr.msk.mxu0 %vm54_vm0, %v119_v55  ;;  %290 = vmatprep.subr.msk.mxu1 %vm54_vm0, %v119_v55 }
  0x13   :  { %v303_v11 = vpop.eup %302  ;;  %v39_v12 = vadd.f32 1.0, %v301_v9 }
  0x14   :  { %v305_v13 = vpop.eup %304  ;;  %306 = vrcp.f32 %v38_v10  ;;  %v40_v14 = vadd.f32 1.0, %v303_v11 }
  0x15   :  { %308 = vrcp.f32 %v39_v12  ;;  %v41_v15 = vadd.f32 1.0, %v305_v13  ;;  %280 = vmatpush3.xpose.msk.msra.mxu0 %vm54_vm0, %v119_v55  ;;  %294 = vmatpush3.xpose.msk.msra.mxu1 %vm54_vm0, %v119_v55 }
  0x16   :  { %310 = vrcp.f32 %v40_v14 }
  0x17   :  { %312 = vrcp.f32 %v41_v15 }
  0x21   :  { %v307_v18 = vpop.eup %306 }
  0x22   :  { %v309_v20 = vpop.eup %308  ;;  %v50_v21 = vmul.f32 %v307_v18, %v18_v16 }
  0x23   :  { %v311_v23 = vpop.eup %310  ;;  %v51_v24 = vmul.f32 %v309_v20, %v19_v17 }
  0x24   :  { %v313_v25 = vpop.eup %312  ;;  %v55_v26 = vsel %vm54_vm0, %v50_v21, 0.0  ;;  %v52_v27 = vmul.f32 %v311_v23, %v20_v19 }
  0x25   :  { %56 = vadd.xlane.f32.xlu0 %v55_v26  ;;  %v58_v28 = vsel %vm54_vm0, %v51_v24, 0.0  ;;  %v53_v29 = vmul.f32 %v313_v25, %v21_v22 }
  0x26   :  { %59 = vadd.xlane.f32.xlu1 %v58_v28  ;;  %v61_v30 = vsel %vm54_vm0, %v52_v27, 0.0 }
  0x27   :  { %v64_v31 = vsel %vm54_vm0, %v53_v29, 0.0 }
  0x29   :  { %62 = vadd.xlane.f32.xlu0 %v61_v30 }
  0x2a   :  { %65 = vadd.xlane.f32.xlu1 %v64_v31 }
  0xae   :  { %v57_v32 = vpop.xlane.xlu0 %56 }
  0xaf   :  { %v68_v33 = vmul.f32 0.03125, %v57_v32  ;;  %v60_v34 = vpop.xlane.xlu1 %59 }
  0xb0   :  { %v69_v35 = vmul.f32 0.03125, %v60_v34 }
  0xb1   :  { %v72_v36 = vsub.f32 %v50_v21, %v68_v33 }
  0xb2   :  { %v400_v37 = vsub.f32 %v51_v24, %v69_v35  ;;  %v63_v38 = vpop.xlane.xlu0 %62 }
  0xb3   :  { %v70_v39 = vmul.f32 0.03125, %v63_v38  ;;  %v66_v40 = vpop.xlane.xlu1 %65  ;;  %v76_v41 = vmul.f32 %v72_v36, %v72_v36 }
  0xb4   :  { %v71_v42 = vmul.f32 0.03125, %v66_v40  ;;  %v77_v43 = vmul.f32 %v400_v37, %v400_v37 }
  0xb5   :  { %v74_v44 = vsub.f32 %v52_v27, %v70_v39  ;;  %v80_v45 = vsel %vm54_vm0, %v76_v41, 0.0 }
  0xb6   :  { %v75_v46 = vsub.f32 %v53_v29, %v71_v42  ;;  %81 = vadd.xlane.f32.xlu0 %v80_v45  ;;  %v83_v47 = vsel %vm54_vm0, %v77_v43, 0.0 }
  0xb7   :  { %v78_v48 = vmul.f32 %v74_v44, %v74_v44 }
  0xb8   :  { %v79_v49 = vmul.f32 %v75_v46, %v75_v46 }
  0xb9   :  { %v86_v50 = vsel %vm54_vm0, %v78_v48, 0.0 }
  0xba   :  { %84 = vadd.xlane.f32.xlu0 %v83_v47  ;;  %87 = vadd.xlane.f32.xlu1 %v86_v50  ;;  %v89_v51 = vsel %vm54_vm0, %v79_v49, 0.0 }
  0xbe   :  { %90 = vadd.xlane.f32.xlu1 %v89_v51 }
 0x13f   :  { %v82_v56 = vpop.xlane.xlu0 %81 }
 0x140   :  { %v92_v57 = vmul.f32 0.03125, %v82_v56 }
 0x142   :  { %v96_v58 = vadd.f32 1e-05, %v92_v57 }
 0x143   :  { %v88_v59 = vpop.xlane.xlu1 %87  ;;  %v85_v60 = vpop.xlane.xlu0 %84 }
 0x144   :  { %314 = vrsqrt.f32 %v96_v58  ;;  %v94_v61 = vmul.f32 0.03125, %v88_v59  ;;  %v93_v62 = vmul.f32 0.03125, %v85_v60 }
 0x146   :  { %v98_v63 = vadd.f32 1e-05, %v94_v61  ;;  %v97_v0 = vadd.f32 1e-05, %v93_v62 }
 0x147   :  { %v91_v1 = vpop.xlane.xlu1 %90 }
 0x148   :  { %316 = vrsqrt.f32 %v98_v63  ;;  %v95_v2 = vmul.f32 0.03125, %v91_v1 }
 0x149   :  { %318 = vrsqrt.f32 %v97_v0 }
 0x14a   :  { %v99_v3 = vadd.f32 1e-05, %v95_v2 }
 0x14c   :  { %320 = vrsqrt.f32 %v99_v3 }
 0x151   :  { %v315_v4 = vpop.eup %314 }
 0x152   :  { %v104_v6 = vmul.f32 %v315_v4, %v72_v36 }
 0x154   :  { %v115_v7 = vmul.f32 %v256_v5, %v104_v6 }
 0x155   :  { %v317_v8 = vpop.eup %316 }
 0x156   :  { %v319_v9 = vpop.eup %318  ;;  %281 = vmatprep.mubr.msk.f32.mxu0 %vm54_vm0, %v115_v7  ;;  %v106_v10 = vmul.f32 %v317_v8, %v74_v44 }
 0x157   :  { %v105_v11 = vmul.f32 %v319_v9, %v400_v37 }
 0x158   :  { %v117_v12 = vmul.f32 %v256_v5, %v106_v10 }
 0x159   :  { %v321_v13 = vpop.eup %320  ;;  %v116_v14 = vmul.f32 %v256_v5, %v105_v11 }
 0x15a   :  { %284 = vmatprep.mubr.msk.f32.mxu1 %vm54_vm0, %v117_v12  ;;  %v107_v15 = vmul.f32 %v321_v13, %v75_v46 }
 0x15b   :  { %282 = vmatmul.mubr.msk.f32.vlgmr.msra.gmra.mxu0 %vm54_vm0, %v116_v14 }
 0x15c   :  { %v118_v16 = vmul.f32 %v256_v5, %v107_v15 }
 0x15e   :  { %285 = vmatmul.mubr.msk.f32.vlgmr.msra.gmra.mxu1 %vm54_vm0, %v118_v16 }
 0x21b   :  { %v283_v17 = vpop.f32.mrf.mxu0 }
 0x21c   :  { %233 = vst.msk [vmem:[#allocation2 + $0x8] sm:$0xff] %vm54_vm0, %v283_v17 }
 0x21d   :  { %v213_v18 = vpop.f32.mrf.mxu0 }
 0x21e   :  { %232 = vst.msk [vmem:[#allocation2] sm:$0xff] %vm54_vm0, %v213_v18  ;;  %v286_v19 = vpop.f32.mrf.mxu1 }
 0x21f   :  { %235 = vst.msk [vmem:[#allocation2 + $0x18] sm:$0xff] %vm54_vm0, %v286_v19 }
 0x220   :  { %v223_v20 = vpop.f32.mrf.mxu1 }
 0x221   :  { %234 = vst.msk [vmem:[#allocation2 + $0x10] sm:$0xff] %vm54_vm0, %v223_v20 }
 0x222   :  { %333 = shalt.err (!%p330_p4)
}
 0x223   :  { %s345_s14 = smov 128   ;;  %s346_s15 = smov 8  }
 0x224   :  { %247 = dma.vmem_to_hbm [thread:$0]  %s242_s12, 512, %s455_s4, [#allocation3], %s345_s14, %s345_s14, %s346_s15  }
 0x225   :  { %342 = dma.done.wait [#allocation3], 512  }
 0x226   :  { %343 = vsyncadd [#allocation3], 4294966784 }
 0x227   :  { %251 = vsyncpa [#allocation3], 1 }

// kernel: polar_rnn_forward.2
= control target key start
LH: loop header
LB: loop body
LE: loop exit
PB: predicated region body
PF: predicated region fallthrough
CT: control target
= control target key end

     0   :  { %s1103_s18 = smov 0   ;;  %s1105_s19 = smov 0   ;;  %s1209_s0 = inlined_call_operand.vmem [shape: f32[8,16,8], index: 0, kind: input, shape index: {}]   ;;  %s1210_s1 = inlined_call_operand.vmem [shape: f32[8,16,8], index: 1, kind: input, shape index: {}]   ;;  %s1211_s2 = inlined_call_operand.vmem [shape: f32[8,16,8], index: 2, kind: input, shape index: {}]   ;;  %s1212_s3 = inlined_call_operand.vmem [shape: f32[8,16,1], index: 3, kind: input, shape index: {}]   ;;  %s1213_s4 = inlined_call_operand.vmem [shape: f32[8,2,1,8], index: 4, kind: input, shape index: {}]   ;;  %s1214_s5 = inlined_call_operand.vmem [shape: f32[8,16,8], index: 5, kind: output, shape index: {}]  }
   0x1   :  { %s1107_s20 = smov 0   ;;  %s1109_s21 = smov 0  }
   0x2   :  { %s1111_s22 = smov 0  }
   0x3 LB: > { %s24_s23 = sadd.s32 1, %s1059_s20  ;;  %s27_s24 = sadd.s32 1, %s1063_s21  ;;  %s1067_s22 = sphi %s1111_s22, %s15_s22   ;;  %s1063_s21 = sphi %s1109_s21, %s1218_s21   ;;  %s1059_s20 = sphi %s1107_s20, %s1217_s20   ;;  %s1055_s19 = sphi %s1105_s19, %s1216_s19   ;;  %s1051_s18 = sphi %s1103_s18, %s1215_s18  }
   0x4   : > { %p25_p0 = scmp.ge.s32.totalorder %s24_s23, 2  ;;  %p926_p1 = scmp.ge.s32.totalorder %s1067_s22, 1 }
   0x5   : > { %p265_p2 = scmp.lt.s32.totalorder %s1067_s22, 17 }
   0x6   : > { %s1220_s23 = smov (%p25_p0, %s24_s23), 0  ;;  %s1222_s24 = smov (!%p25_p0, %s27_s24), %s1063_s21 }
   0x7   : > { %p266_p3 = pnand %p926_p1, %p265_p2  ;;  %p29_p4 = scmp.ge.s32.totalorder %s1222_s24, 8 }
   0x8   : > { %p330_p5 = scmp.lt.s32.totalorder (!%p266_p3), %s1055_s19, 7  ;;  %p332_p6 = scmp.lt.s32.totalorder (!%p266_p3), %s1051_s18, 1 }
   0x9   : > { %s1224_s24 = smov (%p29_p4, %s1222_s24), 0  ;;  %269 = sbr.rel (%p266_p3) target bundleno = 497 (0x1f1), region = 40 }
   0xa   : > { %p938_p7 = scmp.ne.s32.totalorder (!%p266_p3), %s1051_s18, 0 }
   0xe   : > { %s1226_s19 = smov (!%p330_p5, %s1055_s19), 7 }
   0xf   : > { %s333_s25 = scalar_select %p332_p6, %s1051_s18, 1 }
  0x10   : > { %s927_s26 = sshll.u32 %s1226_s19, 1 }
  0x11   : > { %s1137_s27 = sadd.s32 %s927_s26, %s333_s25  ;;  %380 = sbr.rel (%p938_p7) target bundleno = 24 (0x18), region = 44 }
  0x12   : > { %s1140_s28 = sshll.u32 %s1137_s27, 3  ;;  %s368_s6 = scalar_lea.vmem %s1213_s4, %s1137_s27 }
  0x13   : > { %s337_s9 = scalar_lea.vmem %s1209_s0, %s1140_s28  ;;  %s345_s12 = scalar_lea.vmem %s1210_s1, %s1140_s28 }
  0x14   : > { %s353_s15 = scalar_lea.vmem %s1211_s2, %s1140_s28  ;;  %s361_s19 = scalar_lea.vmem %s1212_s3, %s1140_s28 }
  0x15   : > { %s376_s29 = scalar_lea.vmem %s1214_s5, %s1140_s28 }
  0x16   : > { %vm381_vm0 = vcmask 64512   ;;  %v1069_v0 = vmov 0.0  }
  0x17   : > { %382 = vst.msk [vmem:[#allocation2] sm:$0xff] %vm381_vm0, %v1069_v0 }
  0x18 PF: > { %v384_v1 = vld [vmem:[%s345_s12] sm:$0xff]  ;;  %vm409_vm1 = vcmask 64512   ;;  %v1070_v2 = vmov 0.0   ;;  %vm1071_vm2 = vmmov 0   ;;  %v389_v4 = vlaneseq }
  0x19   : > { %955 = vmatprep.subr.mxu0 %v1070_v2  ;;  %957 = vmatprep.mubr.msk.f32.mxu0 %vm1071_vm2, %v1070_v2  ;;  %v386_v3 = vld [vmem:[%s361_s19] sm:$0xff]  ;;  %v1072_v6 = vmov 0  }
  0x1a   : > { %956 = vmatpush3.xpose.msk.msra.mxu0 %vm409_vm1, %v384_v1  ;;  %v383_v5 = vld [vmem:[%s337_s9] sm:$0xff]  ;;  %1021 = vset.pattern.permute.xlu0 %v1072_v6  ;;  %v487_v7 = vmul.f32 1.442695, %v386_v3  ;;  %v390_v8 = vshrl.u32 %v389_v4, 7  ;;  %v392_v16 = vand.u32 127, %v389_v4 }
  0x1b   : > { %1022 = vset.pattern.permute.xlu1 %v1072_v6  ;;  %960 = vmatprep.subr.mxu1 %v1070_v2  ;;  %v385_v17 = vld [vmem:[%s353_s15] sm:$0xff] }
  0x1c   : > { %1023 = vpow2.f32 %v487_v7  ;;  %962 = vmatprep.mubr.msk.f32.mxu1 %vm1071_vm2, %v1070_v2  ;;  %970 = vmatprep.subr.mxu0 %v1070_v2  ;;  %v644_v9 = vsub.s32 7, %v390_v8  ;;  %vm393_vm3 = vcmp.ge.s32.totalorder %v390_v8, %v392_v16  ;;  %v939_v22 = vld [vmem:[%s368_s6] ss:$0 sm:$0xff] }
  0x1d   : > { %958 = vmatmul.mubr.msk.f32.vlgmr.msra.gmra.mxu0 %vm409_vm1, %v383_v5 }
  0x1e   : > { %972 = vmatprep.mubr.msk.f32.mxu0 %vm1071_vm2, %v1070_v2  ;;  %v645_v10 = vrot.slane %v386_v3, %v644_v9  ;;  %v388_v15 = vld [vmem:[#allocation2] sm:$0xff]  ;;  %971 = vmatpush3.msra.mxu0 %v385_v17 }
  0x1f   : > { %961 = vmatpush3.msra.mxu1 %v388_v15 }
  0x20   : > { %v646_v11 = vsub.f32 %v645_v10, %v386_v3  ;;  %965 = vmatprep.subr.mxu1 %v1070_v2 }
  0x22   : > { %v647_v12 = vmul.f32 1.442695, %v646_v11 }
  0x24   : > { %1025 = vpow2.f32 %v647_v12 }
  0x29   : > { %v1024_v13 = vpop.eup %1023 }
  0x2a   : > { %491 = vperm.xlu1 %1022, %v1024_v13   ;;  %v655_v31 = vrot.slane %v1024_v13, 7 }
  0x2c   : > { %975 = vpush %v655_v31 }
  0x31   : > { %v1026_v14 = vpop.eup %1025 }
  0x32   : > { %651 = vperm.xlu0 %1021, %v1026_v14  }
  0x36   : > { %396 = vperm.xlu0 %1021, %v386_v3  }
  0x5d   : > { %s976_s9 = spop %975 }
  0x5e   : > { %v657_v38 = vstv %s976_s9 }
  0x5f   : > { %v659_v39 = vmul.f32 %v657_v38, %v388_v15 }
  0xa5   : > { %v492_v18 = vpop.permute.xlu1 %491 }
  0xa6   : > { %v494_v19 = vmul.f32 %v492_v18, %v383_v5 }
  0xa8   : > { %963 = vmatmul.mubr.msk.f32.vlgmr.msra.gmra.mxu1 %vm409_vm1, %v494_v19 }
  0xa9   : > { %966 = vmatpush3.msra.mxu1 %v385_v17  ;;  %967 = vmatprep.mubr.msk.f32.mxu1 %vm1071_vm2, %v1070_v2 }
  0xad   : > { %v652_v20 = vpop.permute.xlu0 %651 }
  0xae   : > { %v654_v21 = vmul.f32 %v652_v20, %v384_v1 }
  0xb0   : > { %660 = vxpose.xlu1.b32.start.end [1/1] (short) (narrow) %v654_v21, 8 }
  0xb1   : > { %v397_v23 = vpop.permute.xlu0 %396 }
  0xb2   : > { %v405_v24 = vsub.f32 %v397_v23, %v939_v22 }
  0xb4   : > { %v406_v25 = vmul.f32 1.442695, %v405_v24 }
  0xb6   : > { %1027 = vpow2.f32 %v406_v25 }
  0xc3   : > { %v1028_v26 = vpop.eup %1027 }
  0xc4   : > { %v408_v27 = vsel %vm393_vm3, %v1028_v26, 0.0 }
  0xdd   : > { %v482_v28 = vpop.f32.mrf.mxu0 }
  0xde   : > { %v486_v29 = vmul.f32 %v482_v28, %v408_v27 }
  0xdf   : > { %v959_v30 = vpop.f32.mrf.mxu0 }
  0xe0   : > { %968 = vmatmul.mubr.msk.f32.vlgmr.msra.gmra.mxu1 %vm409_vm1, %v486_v29 }
 0x12c   : > { %v676_v32 = vpop.trf.xlu1 }
 0x12d   : > { %973 = vmatmul.mubr.msk.f32.vlgmr.msra.gmra.mxu0 %vm409_vm1, %v676_v32 }
 0x168   : > { %v564_v33 = vpop.f32.mrf.mxu1 }
 0x16a   : > { %v964_v34 = vpop.f32.mrf.mxu1 }
 0x1a0   : > { %v637_v35 = vpop.f32.mrf.mxu1 }
 0x1a1   : > { %v638_v36 = vadd.f32 %v637_v35, %v564_v33 }
 0x1a2   : > { %v969_v37 = vpop.f32.mrf.mxu1 }
 0x1a3   : > { %641 = vst.msk [vmem:[%s376_s29] sm:$0xff] %vm409_vm1, %v638_v36 }
 0x1ed   : > { %v761_v40 = vpop.f32.mrf.mxu0 }
 0x1ee   : > { %v765_v41 = vadd.f32 %v761_v40, %v659_v39 }
 0x1ef   : > { %v974_v42 = vpop.f32.mrf.mxu0 }
 0x1f0   : > { %766 = vst.msk [vmem:[#allocation2] sm:$0xff] %vm409_vm1, %v765_v41 }
 0x1f1 PF: > { %s15_s22 = sadd.s32 1, %s1067_s22   ;;  %s1215_s18 = smov %s1059_s20 }
 0x1f2   : > { %p12_p8 = scmp.ge.s32.totalorder %s15_s22, 18   ;;  %s1216_s19 = smov %s1063_s21 }
 0x1f3   : > { %s1217_s20 = smov %s1220_s23  ;;  %s1218_s21 = smov %s1224_s24 }
 0x1f4   :  { %14 = sbr.rel (!%p12_p8) target bundleno = 3 (0x3), region = 86 }

</bundles_post_ra>
